<compile_context>
chip_gen: v6e
topology: v6e:2x2x1
jax: 0.10.0
libtpu: 0.0.40
codegen_flags: <defaults>
</compile_context>

<pallas_src>
import functools

import jax
import jax.numpy as jnp
from jax import lax
from jax.experimental import pallas as pl
from jax.experimental.pallas import tpu as pltpu


def _round_up(v, m):
    return -(-v // m) * m


def _device_info():
    """Returns (tensorcores_per_chip, physical VMEM bytes per core)."""
    kind = ""
    try:
        kind = jax.devices()[0].device_kind.lower()
    except Exception:
        pass
    is_v7 = "v7" in kind
    n_tc = 2 if is_v7 else 1                      # v5e / v6e: 1 TC per chip
    vmem_cap = (64 << 20) if is_v7 else (128 << 20)
    try:
        vmem_cap = int(pltpu.get_tpu_info().vmem_capacity_bytes)
    except Exception:
        pass
    return n_tc, vmem_cap


def _orth_loss_kernel(x_ref, o_ref, acc_ref, *, batch, bt, blocks_per_core,
                      ragged, mask_k_tail, k_valid_in_last):
    p = pl.program_id(0)
    j = pl.program_id(1)
    k = pl.program_id(2)
    nj = pl.num_programs(1)
    nk = pl.num_programs(2)

    @pl.when(jnp.logical_and(j == 0, k == 0))
    def _init():
        acc_ref[...] = jnp.zeros_like(acc_ref)

    # (bt, D, Kt) slab; compute in f32 (handles low-precision inputs on v5e).
    x = x_ref[...].astype(jnp.float32)
    col = jnp.sum(x, axis=1)                      # (bt, Kt): sum over rows D
    part = col * col - jnp.sum(x * x, axis=1)     # (bt, Kt): off-diag contrib

    if ragged or mask_k_tail:
        # Only blocks that actually cross the batch boundary (or the last,
        # partial K block) pay for the mask; steady-state steps stay plain.
        crosses_b = jnp.bool_(False)
        if ragged:
            start = (p * blocks_per_core + j) * bt
            crosses_b = start + bt > batch        # includes clamped dup blocks
        crosses_k = (k == nk - 1) if mask_k_tail else jnp.bool_(False)
        needs_mask = jnp.logical_or(crosses_b, crosses_k)

        @pl.when(needs_mask)
        def _masked():
            m = part
            if ragged:
                row = lax.broadcasted_iota(jnp.int32, part.shape, 0)
                m = jnp.where(row < (batch - start), m, 0.0)
            if mask_k_tail:
                lane = lax.broadcasted_iota(jnp.int32, part.shape, 1)
                valid = jnp.where(k == nk - 1, k_valid_in_last, part.shape[1])
                m = jnp.where(lane < valid, m, 0.0)
            acc_ref[...] += m

        @pl.when(jnp.logical_not(needs_mask))
        def _plain():
            acc_ref[...] += part
    else:
        acc_ref[...] += part                      # pure VPU accumulation

    @pl.when(jnp.logical_and(j == nj - 1, k == nk - 1))
    def _finalize():
        # Single cross-lane reduce + scalar store per core.
        o_ref[...] = jnp.sum(acc_ref[...]).reshape(1, 1, 1)


def orthogonal_matrix_loss(x, *, target_block_bytes=4 << 20):
    """x: (B, D, K) array. Returns scalar float32 loss."""
    B, D, K = x.shape
    itemsize = jnp.dtype(x.dtype).itemsize
    lane = 128
    sub = 8 * max(1, 4 // itemsize)               # f32: 8, bf16: 16, i8: 32

    # (8,128)-padded footprint of one (1, D, K) slab in VMEM.
    pad_d = _round_up(D, sub)
    pad_k_full = _round_up(K, lane)
    slab_bytes = pad_d * pad_k_full * itemsize

    if slab_bytes <= target_block_bytes:
        kt, k_blocks = K, 1
        bt = int(max(1, min(B, target_block_bytes // slab_bytes)))
    else:
        # One batch element doesn't fit the tile budget: tile K instead.
        bt = 1
        lane_block_bytes = pad_d * lane * itemsize
        lanes_fit = int(max(1, target_block_bytes // lane_block_bytes))
        kt = min(lanes_fit, pad_k_full // lane) * lane
        k_blocks = -(-K // kt)
        # TODO(synk): add a D-tiling axis (carrying per-(b,k) column sums)
        # if even a (1, D, 128) slab ever exceeds the per-core VMEM budget.

    mask_k_tail = (k_blocks > 1) and (K % kt != 0)
    k_valid_in_last = K - (k_blocks - 1) * kt

    n_blocks = -(-B // bt)
    n_cores, vmem_cap = _device_info()
    if n_blocks < 2:
        n_cores = 1
    blocks_per_core = -(-n_blocks // n_cores)
    ragged = (n_cores * blocks_per_core * bt) != B

    def x_index_map(p, j, k):
        blk = p * blocks_per_core + j
        # Clamp so the block index is always in bounds; masked in-kernel.
        return (jnp.minimum(blk, n_blocks - 1), 0, k)

    kernel = functools.partial(
        _orth_loss_kernel, batch=B, bt=bt, blocks_per_core=blocks_per_core,
        ragged=ragged, mask_k_tail=mask_k_tail, k_valid_in_last=k_valid_in_last)

    # Padded VMEM accounting: double-buffered input + f32 scratch + headroom.
    pad_kt = _round_up(kt, lane)
    tile_bytes = bt * pad_d * pad_kt * itemsize
    scratch_bytes = _round_up(bt, 8) * pad_kt * 4
    vmem_need = 2 * tile_bytes + scratch_bytes + (2 << 20)

    params = {"dimension_semantics": ("parallel", "arbitrary", "arbitrary")}
    if vmem_need > (16 << 20):
        # Generation-aware cap (leave headroom below physical VMEM, which is
        # only 64 MiB per core on v7x vs 128 MiB on v5e/v6e).
        cap = int(vmem_cap * 6 // 10)
        params["vmem_limit_bytes"] = int(min(vmem_need, cap))

    cost = pl.CostEstimate(
        flops=3 * B * D * K,
        transcendentals=0,
        bytes_accessed=int(x.size) * itemsize + n_cores * 4)

    out = pl.pallas_call(
        kernel,
        out_shape=jax.ShapeDtypeStruct((n_cores, 1, 1), jnp.float32),
        grid_spec=pltpu.PrefetchScalarGridSpec(
            num_scalar_prefetch=0,
            grid=(n_cores, blocks_per_core, k_blocks),
            in_specs=[pl.BlockSpec((bt, D, kt), x_index_map)],
            out_specs=pl.BlockSpec((1, 1, 1), lambda p, j, k: (p, 0, 0)),
            scratch_shapes=[pltpu.VMEM((bt, kt), jnp.float32)],
        ),
        compiler_params=pltpu.CompilerParams(**params),
        cost_estimate=cost,
    )(x)

    # Sum per-core partials and divide by the true batch size in the wrapper.
    return jnp.sum(out) / jnp.float32(B)


def _reference(x):
    m = jnp.einsum("bdk,bek->bde", x, x)
    total = jnp.sum(m)
    diag = jnp.sum(jnp.trace(m, axis1=1, axis2=2))
    return (total - diag) / x.shape[0]


def _check(got, want):
    got = jax.block_until_ready(got)
    want = jax.block_until_ready(want)
    assert jnp.allclose(got, want, rtol=2e-4, atol=2e-3), (got, want)


if __name__ == "__main__":
    k1, k2, k3, k4 = jax.random.split(jax.random.PRNGKey(0), 4)

    # 1) Small shape matching the PyTorch module's (B, D, K) input.
    x1 = jax.random.normal(k1, (2, 16, 32), dtype=jnp.float32)
    _check(orthogonal_matrix_loss(x1), _reference(x1))

    # 2) Force batch tiling (bt=2) with a ragged batch tail (B=7).
    x2 = jax.random.normal(k2, (7, 16, 64), dtype=jnp.float32)
    _check(orthogonal_matrix_loss(x2, target_block_bytes=16 * 1024),
           _reference(x2))

    # 3) Force the K-tiling axis (K=256 -> Kt=128, even split).
    x3 = jax.random.normal(k3, (3, 16, 256), dtype=jnp.float32)
    _check(orthogonal_matrix_loss(x3, target_block_bytes=8 * 1024),
           _reference(x3))

    # 4) K-tiling with a ragged K tail (K=320 -> Kt=256, 64-wide tail block).
    x4 = jax.random.normal(k4, (2, 8, 320), dtype=jnp.float32)
    _check(orthogonal_matrix_loss(x4, target_block_bytes=8 * 1024),
           _reference(x4))

    print("KERNEL_OK")
</pallas_src>

<mosaic_0001>
module attributes {stable_mosaic.version = 11 : i64} {
  func.func @_orth_loss_kernel(%arg0: i32, %arg1: i32, %arg2: i32, %arg3: memref<2x16x32xf32, #tpu.memory_space<vmem>>, %arg4: memref<1x1x1xf32, #tpu.memory_space<vmem>>, %arg5: memref<2x32xf32, #tpu.memory_space<vmem>>) attributes {dimension_semantics = [#tpu.dimension_semantics<parallel>, #tpu.dimension_semantics<arbitrary>, #tpu.dimension_semantics<arbitrary>], iteration_bounds = array<i64: 1, 1, 1>, scalar_prefetch = 0 : i64, scratch_operands = 1 : i64, tpu.core_type = #tpu.core_type<tc>, window_params = [{transform_indices = @transform_0, window_bounds = array<i64: 2, 16, 32>}, {transform_indices = @transform_1, window_bounds = array<i64: 1, 1, 1>}]} {
    %c0_i32 = arith.constant 0 : i32
    %0 = arith.cmpi eq, %arg1, %c0_i32 : i32
    %c0_i32_0 = arith.constant 0 : i32
    %1 = arith.cmpi eq, %arg2, %c0_i32_0 : i32
    %2 = arith.andi %0, %1 : i1
    %3 = arith.extui %2 : i1 to i32
    %c0_i32_1 = arith.constant 0 : i32
    %4 = arith.cmpi ne, %3, %c0_i32_1 : i32
    scf.if %4 {
      %cst_12 = arith.constant 0.000000e+00 : f32
      %19 = vector.broadcast %cst_12 : f32 to vector<2x32xf32>
      %c0_13 = arith.constant 0 : index
      %c0_14 = arith.constant 0 : index
      %20 = vector.load %arg5[%c0_13, %c0_14] : memref<2x32xf32, #tpu.memory_space<vmem>>, vector<2x32xf32>
      tpu.vector_store %arg5[%c0_13, %c0_14], %19 {strides = array<i32>} : memref<2x32xf32, #tpu.memory_space<vmem>>, vector<2x32xf32>,
    } else {
    }
    %c0 = arith.constant 0 : index
    %c0_2 = arith.constant 0 : index
    %c0_3 = arith.constant 0 : index
    %5 = vector.load %arg3[%c0, %c0_2, %c0_3] : memref<2x16x32xf32, #tpu.memory_space<vmem>>, vector<2x16x32xf32>
    %cst = arith.constant dense<0.000000e+00> : vector<2x32xf32>
    %6 = vector.multi_reduction <add>, %5, %cst [1] : vector<2x16x32xf32> to vector<2x32xf32>
    %7 = arith.mulf %6, %6 : vector<2x32xf32>
    %8 = arith.mulf %5, %5 : vector<2x16x32xf32>
    %cst_4 = arith.constant dense<0.000000e+00> : vector<2x32xf32>
    %9 = vector.multi_reduction <add>, %8, %cst_4 [1] : vector<2x16x32xf32> to vector<2x32xf32>
    %10 = arith.subf %7, %9 : vector<2x32xf32>
    %c0_5 = arith.constant 0 : index
    %c0_6 = arith.constant 0 : index
    %11 = vector.load %arg5[%c0_5, %c0_6] : memref<2x32xf32, #tpu.memory_space<vmem>>, vector<2x32xf32>
    %12 = arith.addf %11, %10 : vector<2x32xf32>
    %c0_7 = arith.constant 0 : index
    %c0_8 = arith.constant 0 : index
    %13 = vector.load %arg5[%c0_7, %c0_8] : memref<2x32xf32, #tpu.memory_space<vmem>>, vector<2x32xf32>
    tpu.vector_store %arg5[%c0_7, %c0_8], %12 {strides = array<i32>} : memref<2x32xf32, #tpu.memory_space<vmem>>, vector<2x32xf32>,
    %c0_i32_9 = arith.constant 0 : i32
    %14 = arith.cmpi eq, %arg1, %c0_i32_9 : i32
    %c0_i32_10 = arith.constant 0 : i32
    %15 = arith.cmpi eq, %arg2, %c0_i32_10 : i32
    %16 = arith.andi %14, %15 : i1
    %17 = arith.extui %16 : i1 to i32
    %c0_i32_11 = arith.constant 0 : i32
    %18 = arith.cmpi ne, %17, %c0_i32_11 : i32
    scf.if %18 {
      %c0_12 = arith.constant 0 : index
      %c0_13 = arith.constant 0 : index
      %19 = vector.load %arg5[%c0_12, %c0_13] : memref<2x32xf32, #tpu.memory_space<vmem>>, vector<2x32xf32>
      %20 = vector.shape_cast %19 : vector<2x32xf32> to vector<1x2x32xf32>
      %cst_14 = arith.constant dense<0.000000e+00> : vector<1xf32>
      %21 = vector.multi_reduction <add>, %20, %cst_14 [1, 2] : vector<1x2x32xf32> to vector<1xf32>
      %22 = vector.shape_cast %21 : vector<1xf32> to vector<1x1x1xf32>
      %23 = vector.extract %22[0, 0, 0] : f32 from vector<1x1x1xf32>
      %24 = vector.broadcast %23 : f32 to vector<1x1x1xf32>
      %c0_15 = arith.constant 0 : index
      %c0_16 = arith.constant 0 : index
      %c0_17 = arith.constant 0 : index
      %25 = vector.load %arg4[%c0_15, %c0_16, %c0_17] : memref<1x1x1xf32, #tpu.memory_space<vmem>>, vector<1x1x1xf32>
      tpu.vector_store %arg4[%c0_15, %c0_16, %c0_17], %24 {strides = array<i32>} : memref<1x1x1xf32, #tpu.memory_space<vmem>>, vector<1x1x1xf32>,
    } else {
    }
    return
  }
  func.func @transform_0(%arg0: i32, %arg1: i32, %arg2: i32) -> (i32, i32, i32) {
    %c1_i32 = arith.constant 1 : i32
    %0 = arith.muli %arg0, %c1_i32 : i32
    %1 = arith.addi %0, %arg1 : i32
    %c0_i32 = arith.constant 0 : i32
    %2 = arith.minsi %1, %c0_i32 : i32
    %c0_i32_0 = arith.constant 0 : i32
    %c0_i32_1 = arith.constant 0 : i32
    return %2, %c0_i32_0, %arg2 : i32, i32, i32
  }
  func.func @transform_1(%arg0: i32, %arg1: i32, %arg2: i32) -> (i32, i32, i32) {
    %c0_i32 = arith.constant 0 : i32
    %c0_i32_0 = arith.constant 0 : i32
    %c0_i32_1 = arith.constant 0 : i32
    return %arg0, %c0_i32, %c0_i32_0 : i32, i32, i32
  }
}

</mosaic_0001>

<bundles_post_ra>
// kernel: tpu_custom_call.1
= control target key start
LH: loop header
LB: loop body
LE: loop exit
PB: predicated region body
PF: predicated region fallthrough
CT: control target
= control target key end

     0   :  { %6 = vsyncpa [#allocation4], 0  ;;  %s216_s0 = inlined_call_operand.hbm [shape: f32[2,16,32], index: 0, kind: input, shape index: {}]   ;;  %s217_s1 = inlined_call_operand.hbm [shape: f32[1,1,1], index: 1, kind: output, shape index: {}]  }
   0x1   :  { %7 = vsyncpa [#allocation5], 0  ;;  %s184_s6 = smov [#allocation3]  }
   0x2   :  { %s20_s7 = sshll.u32 %s184_s6, 4  ;;  %s21_s7 = int_to_ptr.vmem [resolvable:$true] %s20_s7 }
   0x3   :  { %s148_s8 = scalar_lea.vmem %s21_s7, 512  ;;  %p153_p1 = scmp.lt.s32.totalorder %s21_s7, %s21_s7 }
   0x4   :  { %p149_p0 = scmp.ne.s32.totalorder %s21_s7, %s148_s8  ;;  %p154_p2 = scmp.lt.s32.totalorder %s148_s8, %s148_s8 }
   0x6   :  { %p155_p3 = por %p154_p2, %p153_p1 }
   0x8   :  { %p156_p4 = pnand %p155_p3, %p149_p0 }
   0xa   :  { %159 = shalt.err (!%p156_p4)
}
   0xb   :  { %s185_s9 = smov 128   ;;  %s186_s10 = smov 8  }
   0xc   :  { %26 = dma.hbm_to_vmem [thread:$0]  %s216_s0, 512, %s21_s7, [#allocation4], %s185_s9, %s185_s9, %s186_s10  }
   0xd   :  { %180 = dma.done.wait [#allocation4], 512  }
   0xe   :  { %181 = vsyncadd [#allocation4], 4294966784  ;;  %vm40_vm0 = vcmask 254976   ;;  %v187_v0 = vmov 0.0   ;;  %vm46_vm1 = vcmask 261120   ;;  %v42_v1 = vld [vmem:[#allocation3] sm:$0xff] }
   0xf   :  { %41 = vst.msk [vmem:[#allocation2] sm:$0x3] %vm40_vm0, %v187_v0  ;;  %v43_v2 = vld [vmem:[#allocation3 + $0x8] sm:$0xff]  ;;  %v44_v3 = vld [vmem:[#allocation3 + $0x10] sm:$0xff]  ;;  %v45_v4 = vld [vmem:[#allocation3 + $0x18] sm:$0xff]  ;;  %v47_v5 = vsel %vm46_vm1, %v42_v1, 0.0  ;;  %v67_v8 = vmul.f32 %v42_v1, %v42_v1 }
  0x10   :  { %v48_v6 = vsel %vm46_vm1, %v43_v2, 0.0  ;;  %v56_v7 = vsel %vm46_vm1, %v44_v3, 0.0  ;;  %v57_v10 = vsel %vm46_vm1, %v45_v4, 0.0  ;;  %v68_v11 = vmul.f32 %v43_v2, %v43_v2  ;;  %s188_s0 = smov [#allocation6]  }
  0x11   :  { %v49_v9 = vadd.f32 %v48_v6, %v47_v5  ;;  %v69_v12 = vmul.f32 %v44_v3, %v44_v3  ;;  %v58_v13 = vadd.f32 %v57_v10, %v56_v7  ;;  %v70_v14 = vmul.f32 %v45_v4, %v45_v4  ;;  %s122_s13 = sshll.u32 %s188_s0, 4  ;;  %s123_s13 = int_to_ptr.vmem [resolvable:$true] %s122_s13 }
  0x12   :  { %v71_v15 = vsel %vm46_vm1, %v67_v8, 0.0  ;;  %v72_v17 = vsel %vm46_vm1, %v68_v11, 0.0  ;;  %vm94_vm2 = vcmask 1041409   ;;  %vm114_vm3 = vcmask 0   ;;  %s160_s15 = scalar_lea.vmem %s123_s13, 16  ;;  %s164_s16 = scalar_lea.vmem %s123_s13, 32 }
  0x13   :  { %v50_v16 = vrot.slane %v49_v9, 4  ;;  %v80_v18 = vsel %vm46_vm1, %v69_v12, 0.0  ;;  %v59_v19 = vrot.slane %v58_v13, 4  ;;  %v73_v20 = vadd.f32 %v72_v17, %v71_v15  ;;  %p161_p5 = scmp.ne.s32.totalorder %s123_s13, %s160_s15  ;;  %p165_p6 = scmp.lt.s32.totalorder %s123_s13, %s123_s13 }
  0x14   :  { %v81_v21 = vsel %vm46_vm1, %v70_v14, 0.0  ;;  %p166_p7 = scmp.lt.s32.totalorder %s164_s16, %s160_s15 }
  0x15   :  { %v51_v22 = vadd.f32 %v50_v16, %v49_v9  ;;  %v82_v23 = vadd.f32 %v81_v21, %v80_v18  ;;  %v60_v24 = vadd.f32 %v59_v19, %v58_v13  ;;  %v74_v25 = vrot.slane %v73_v20, 4 }
  0x16   :  { %v91_v49 = vld [vmem:[#allocation2] sm:$0x3]  ;;  %p167_p8 = por %p166_p7, %p165_p6 }
  0x17   :  { %v52_v26 = vrot.slane %v51_v22, 2  ;;  %v83_v27 = vrot.slane %v82_v23, 4  ;;  %v61_v28 = vrot.slane %v60_v24, 2  ;;  %v75_v29 = vadd.f32 %v74_v25, %v73_v20 }
  0x18   :  { %p168_p9 = pnand %p167_p8, %p161_p5 }
  0x19   :  { %v53_v30 = vadd.f32 %v52_v26, %v51_v22  ;;  %v84_v31 = vadd.f32 %v83_v27, %v82_v23  ;;  %v62_v32 = vadd.f32 %v61_v28, %v60_v24  ;;  %v76_v33 = vrot.slane %v75_v29, 2 }
  0x1b   :  { %v54_v34 = vrot.slane %v53_v30, 1  ;;  %v85_v35 = vrot.slane %v84_v31, 2  ;;  %v63_v36 = vrot.slane %v62_v32, 1  ;;  %v77_v37 = vadd.f32 %v76_v33, %v75_v29 }
  0x1d   :  { %v55_v38 = vadd.f32 %v54_v34, %v53_v30  ;;  %v86_v39 = vadd.f32 %v85_v35, %v84_v31  ;;  %v64_v40 = vadd.f32 %v63_v36, %v62_v32  ;;  %v78_v41 = vrot.slane %v77_v37, 1 }
  0x1f   :  { %v65_v42 = vmul.f32 %v55_v38, %v55_v38  ;;  %v87_v43 = vrot.slane %v86_v39, 1  ;;  %v66_v44 = vmul.f32 %v64_v40, %v64_v40  ;;  %v79_v45 = vadd.f32 %v78_v41, %v77_v37 }
  0x21   :  { %v88_v46 = vadd.f32 %v87_v43, %v86_v39  ;;  %v89_v47 = vsub.f32 %v65_v42, %v79_v45 }
  0x23   :  { %v90_v48 = vsub.f32 %v66_v44, %v88_v46 }
  0x25   :  { %v95_v50 = vsel %vm94_vm2, %v90_v48, %v89_v47 }
  0x26   :  { %v97_v51 = vadd.f32 %v95_v50, %v91_v49 }
  0x28   :  { %99 = vst.msk [vmem:[#allocation2] sm:$0x3] %vm40_vm0, %v97_v51 }
  0x2f   :  { %v102_v52 = vld [vmem:[#allocation2] sm:$0x3] }
  0x30   :  { %v103_v53 = vsel %vm40_vm0, %v102_v52, 0.0 }
  0x31   :  { %104 = vadd.xlane.f32.xlu0 %v103_v53 }
  0xba   :  { %v105_v54 = vpop.xlane.xlu0 %104 }
  0xbb   :  { %v106_v55 = vrot.slane %v105_v54, 4 }
  0xbd   :  { %v107_v56 = vadd.f32 %v106_v55, %v105_v54 }
  0xbf   :  { %v108_v57 = vrot.slane %v107_v56, 2 }
  0xc1   :  { %v109_v58 = vadd.f32 %v108_v57, %v107_v56 }
  0xc3   :  { %v110_v59 = vrot.slane %v109_v58, 1 }
  0xc5   :  { %v111_v60 = vadd.f32 %v110_v59, %v109_v58 }
  0xc7   :  { %133 = vpush %v111_v60 }
  0xf8   :  { %s134_s14 = spop %133 }
  0xf9   :  { %v113_v61 = vstv %s134_s14 }
  0xfa   :  { %115 = vst.msk [vmem:[#allocation6] sm:$0x1] %vm114_vm3, %v113_v61 }
  0xfb   :  { %171 = shalt.err (!%p168_p9)
}
  0xfc   :  { %125 = dma.vmem_to_hbm [thread:$0]  %s123_s13, 16, %s217_s1, [#allocation5]  }
  0xfd   :  { %182 = dma.done.wait [#allocation5], 16  }
  0xfe   :  { %183 = vsyncadd [#allocation5], 4294967280 }
  0xff   :  { %129 = vsyncpa [#allocation4], 1 }
 0x100   :  { %130 = vsyncpa [#allocation5], 1 }

</bundles_post_ra>
